<compile_context>
chip_gen: v7x
topology: tpu7x:2x2x1
jax: 0.10.0
libtpu: 0.0.40
codegen_flags: <defaults>
</compile_context>

<pallas_src>
import jax
import jax.numpy as jnp
from jax.experimental import pallas as pl
from jax.experimental.pallas import tpu as pltpu


# --------------------------------- helpers ----------------------------------

def _round_up(v, m):
    return (v + m - 1) // m * m


def _pad2(a, rows, cols):
    r, c = a.shape
    return jnp.pad(a, ((0, rows - r), (0, cols - c)))


def _vmem_limit_bytes():
    """Device-aware scoped-VMEM limit: ~96 MiB on v5e/v6e, ~40 MiB on v7x."""
    try:
        cap = pltpu.get_tpu_info().vmem_capacity_bytes
    except Exception:
        cap = 64 * 1024 * 1024
    return max(32 * 1024 * 1024, min(int(cap * 0.75), cap - 24 * 1024 * 1024))


def _choose_tiling(n_pad, f_pad, f_out_pad, budget):
    """Pick (tm, resident_a) so all resident buffers fit the VMEM byte budget."""
    common = (
        n_pad * f_pad * 2          # resident activation (bf16)
        + n_pad * f_pad * 2        # per-layer H = act @ W' (bf16)
        + 2 * n_pad * f_pad * 2    # x0 input, double buffered (bf16)
        + 2 * f_pad * f_pad * 2    # W'_l input, double buffered (bf16)
        + 2 * f_pad * 4            # shift'_l, double buffered (f32)
    )
    # Preferred: A_hat fully resident in VMEM (single manual DMA).
    for tm in (512, 256, 128):
        if n_pad % tm:
            continue
        if common + 2 * tm * f_out_pad * 4 + n_pad * n_pad * 2 <= budget:
            return tm, True
    # Fallback: stream double-buffered (tm, n_pad) A row tiles, re-read per layer.
    for tm in (512, 256, 128):
        if n_pad % tm:
            continue
        if common + 2 * tm * f_out_pad * 4 + 2 * tm * n_pad * 2 <= budget:
            return tm, False
    # TODO(synk): for huge graphs also tile A's columns (extra K grid axis).
    return 128, False


# ----------------------------- fused Pallas kernel ---------------------------

def _make_kernel(num_layers, tm, f_out_pad, resident_a):
    """grid = (layer l, A_hat row tile i). Activation stays resident in VMEM."""

    def kernel(a_in, x_ref, w_ref, shift_ref, o_ref, act_ref, h_ref, *rest):
        l = pl.program_id(0)
        i = pl.program_id(1)
        is_last = l == num_layers - 1
        row0 = pl.multiple_of(i * tm, tm)

        # Once per layer (row tile 0): H = act_{l-1} @ W'_l  (f32 MXU accumulation).
        # Layer 0 reads the raw input features directly (no resident x copy).
        @pl.when(jnp.logical_and(l == 0, i == 0))
        def _():
            if resident_a:
                a_vmem, sem = rest
                cp = pltpu.make_async_copy(a_in, a_vmem, sem)
                cp.start()                      # overlap the one-time A load ...
            h_ref[...] = jnp.dot(
                x_ref[...], w_ref[0], preferred_element_type=jnp.float32
            ).astype(h_ref.dtype)               # ... with the first H matmul
            if resident_a:
                cp.wait()

        @pl.when(jnp.logical_and(l > 0, i == 0))
        def _():
            h_ref[...] = jnp.dot(
                act_ref[...], w_ref[0], preferred_element_type=jnp.float32
            ).astype(h_ref.dtype)

        # One A_hat row tile of the propagation:  acc = A[rows] @ H + shift'_l
        if resident_a:
            a_vmem, _ = rest
            a_tile = a_vmem[pl.ds(row0, tm), :]
        else:
            a_tile = a_in[...]
        acc = jnp.dot(a_tile, h_ref[...], preferred_element_type=jnp.float32)
        acc = acc + shift_ref[0]

        @pl.when(jnp.logical_not(is_last))
        def _():
            # Hidden layer: BN already folded into W'/shift'; ReLU; keep bf16.
            act_ref[pl.ds(row0, tm), :] = jnp.maximum(acc, 0.0).astype(act_ref.dtype)
            # TODO(synk): F.dropout is identity in eval mode and is not modeled.

        @pl.when(is_last)
        def _():
            o_ref[...] = acc[:, :f_out_pad].astype(o_ref.dtype)

    return kernel


# ------------------------------- JAX wrapper ---------------------------------

def normalized_adjacency(edge_index, num_nodes):
    """A_hat = D^{-1/2} (A + I) D^{-1/2}, the GCNConv propagation matrix (dense)."""
    src, dst = edge_index[0], edge_index[1]
    a = jnp.zeros((num_nodes, num_nodes), jnp.float32)
    a = a.at[dst, src].set(1.0)                      # message from src -> dst
    a = a + jnp.eye(num_nodes, dtype=jnp.float32)    # self loops (edge_index loop-free)
    deg = a.sum(axis=1)
    d = jax.lax.rsqrt(deg)
    return a * d[:, None] * d[None, :]


def deep_grl_forward(x, edge_index, params):
    """DeepGRL.forward(x, edge_index, predict=False), layer_name='GCN', eval mode."""
    n, f_in = x.shape
    num_layers = len(params)
    feat_dims = [f_in] + [p["w"].shape[1] for p in params]
    out_dim = feat_dims[-1]
    f_pad = _round_up(max(feat_dims), 128)           # lane-dense working width
    f_out_pad = _round_up(out_dim, 128)              # output pays only for the final layer

    n_pad = _round_up(max(n, 8), 128)
    vmem_limit = _vmem_limit_bytes()
    tm, resident_a = _choose_tiling(n_pad, f_pad, f_out_pad, int(vmem_limit * 0.9))

    a_hat = normalized_adjacency(edge_index, n)

    # Fold eval-mode BatchNorm into the conv weights (hidden layers only).
    w_list, shift_list = [], []
    for li, p in enumerate(params):
        w = p["w"].astype(jnp.float32)
        b = p["b"].astype(jnp.float32)
        if li < num_layers - 1:
            scale = p["gamma"] * jax.lax.rsqrt(p["var"] + 1e-5)
            shift = b * scale + (p["beta"] - p["mean"] * scale)
            w = w * scale[None, :]
        else:
            shift = b
        w_list.append(_pad2(w, f_pad, f_pad))
        shift_list.append(jnp.pad(shift, (0, f_pad - shift.shape[0])))

    w_stack = jnp.stack(w_list).astype(jnp.bfloat16)              # [L, F, F]  bf16
    shift_stack = jnp.stack(shift_list)[:, None, :]               # [L, 1, F]  f32
    a_pad = _pad2(a_hat, n_pad, n_pad).astype(jnp.bfloat16)       # [N, N]     bf16
    x_pad = _pad2(x.astype(jnp.float32), n_pad, f_pad).astype(jnp.bfloat16)

    grid = (num_layers, n_pad // tm)
    last = num_layers - 1

    if resident_a:
        # A stays in HBM (pl.ANY) and is DMA'd ONCE into a VMEM scratch at (l=0,i=0).
        a_spec = pl.BlockSpec(memory_space=pl.ANY)
        extra_scratch = [
            pltpu.VMEM((n_pad, n_pad), jnp.bfloat16),   # resident A_hat
            pltpu.SemaphoreType.DMA(()),
        ]
    else:
        # Stream (tm, n_pad) row tiles of A (re-read each layer, double-buffered).
        a_spec = pl.BlockSpec((tm, n_pad), lambda l, i: (i, 0))
        extra_scratch = []

    # Output block index only advances during the last layer -> no dead writebacks.
    out_spec = pl.BlockSpec(
        (tm, f_out_pad), lambda l, i: (jnp.where(l == last, i, 0), 0)
    )

    kernel = _make_kernel(num_layers, tm, f_out_pad, resident_a)

    out = pl.pallas_call(
        kernel,
        out_shape=jax.ShapeDtypeStruct((n_pad, f_out_pad), jnp.float32),
        grid_spec=pltpu.PrefetchScalarGridSpec(
            num_scalar_prefetch=0,
            grid=grid,
            in_specs=[
                a_spec,                                               # A_hat
                pl.BlockSpec((n_pad, f_pad), lambda l, i: (0, 0)),    # x0 (layer 0 only)
                pl.BlockSpec((1, f_pad, f_pad), lambda l, i: (l, 0, 0)),  # folded W'_l
                pl.BlockSpec((1, 1, f_pad), lambda l, i: (l, 0, 0)),  # folded shift'_l
            ],
            out_specs=out_spec,
            scratch_shapes=[
                pltpu.VMEM((n_pad, f_pad), jnp.bfloat16),   # resident activation
                pltpu.VMEM((n_pad, f_pad), jnp.bfloat16),   # H = act @ W'_l (per layer)
            ] + extra_scratch,
        ),
        compiler_params=pltpu.CompilerParams(
            # layer l+1 needs the full activation of layer l -> sequential grid.
            dimension_semantics=("arbitrary", "arbitrary"),
            vmem_limit_bytes=vmem_limit,
        ),
    )(a_pad, x_pad, w_stack, shift_stack)

    return out[:n, :out_dim]


# ------------------------- parameter init & reference ------------------------

def glorot(key, f_in, f_out):
    limit = jnp.sqrt(6.0 / (f_in + f_out))
    return jax.random.uniform(key, (f_in, f_out), jnp.float32, -limit, limit)


def init_deep_grl_params(key, input_dim, hidden_layers):
    """GCNConv weights/biases + eval-mode BatchNorm1d stats for hidden layers."""
    params = []
    in_size = input_dim
    num = len(hidden_layers)
    for li, out_size in enumerate(hidden_layers):
        key, kw, kg, kb, km, kv = jax.random.split(key, 6)
        p = dict(
            w=glorot(kw, in_size, out_size),
            b=jnp.zeros((out_size,), jnp.float32),          # GCNConv bias init
        )
        if li < num - 1:                                    # only layers[:-1] use BN
            p.update(
                gamma=jax.random.uniform(kg, (out_size,), jnp.float32, 0.5, 1.5),
                beta=0.1 * jax.random.normal(kb, (out_size,), jnp.float32),
                mean=0.1 * jax.random.normal(km, (out_size,), jnp.float32),
                var=jax.random.uniform(kv, (out_size,), jnp.float32, 0.5, 1.5),
            )
        params.append(p)
        in_size = out_size
    return params


def reference_forward(x, a_hat, params):
    """Pure-JAX f32 reference matching the PyTorch eval-mode forward."""
    h = x
    num = len(params)
    for li, p in enumerate(params):
        h = a_hat @ (h @ p["w"]) + p["b"]
        if li < num - 1:
            scale = p["gamma"] * jax.lax.rsqrt(p["var"] + 1e-5)
            h = (h - p["mean"]) * scale + p["beta"]
            h = jnp.maximum(h, 0.0)
    return h


# ----------------------------------- main ------------------------------------

if __name__ == "__main__":
    key = jax.random.PRNGKey(0)

    N = 16                       # number of graph nodes
    F_IN = 16                    # kwargs['input']
    HIDDEN = [32, 48, 32]        # kwargs['hidden_layers'] (last entry = final GCNConv)

    key, kx, kp = jax.random.split(key, 3)
    x = jax.random.normal(kx, (N, F_IN), jnp.float32)

    # deterministic ring graph (both directions), edge_index: [2, E]
    idx = jnp.arange(N, dtype=jnp.int32)
    fwd = jnp.stack([idx, (idx + 1) % N])
    bwd = jnp.stack([(idx + 1) % N, idx])
    edge_index = jnp.concatenate([fwd, bwd], axis=1)        # [2, 32]

    params = init_deep_grl_params(kp, F_IN, HIDDEN)

    out = deep_grl_forward(x, edge_index, params)
    jax.block_until_ready(out)

    assert out.shape == (N, HIDDEN[-1]) and out.dtype == jnp.float32

    a_hat = normalized_adjacency(edge_index, N)
    ref = reference_forward(x, a_hat, params)
    err = float(jnp.max(jnp.abs(out - ref)))
    assert err < 1e-1, f"max abs err {err}"

    print("KERNEL_OK")
</pallas_src>

<mosaic_0001>
module attributes {stable_mosaic.version = 11 : i64} {
  func.func @kernel(%arg0: i32, %arg1: i32, %arg2: memref<128x128xbf16, #tpu.memory_space<any>>, %arg3: memref<128x128xbf16, #tpu.memory_space<vmem>>, %arg4: memref<1x128x128xbf16, #tpu.memory_space<vmem>>, %arg5: memref<1x1x128xf32, #tpu.memory_space<vmem>>, %arg6: memref<128x128xf32, #tpu.memory_space<vmem>>, %arg7: memref<128x128xbf16, #tpu.memory_space<vmem>>, %arg8: memref<128x128xbf16, #tpu.memory_space<vmem>>, %arg9: memref<128x128xbf16, #tpu.memory_space<vmem>>, %arg10: memref<!tpu.dma_semaphore, #tpu.memory_space<semaphore_mem>>) attributes {dimension_semantics = [#tpu.dimension_semantics<arbitrary>, #tpu.dimension_semantics<arbitrary>], iteration_bounds = array<i64: 3, 1>, scalar_prefetch = 0 : i64, scratch_operands = 4 : i64, tpu.core_type = #tpu.core_type<tc>, window_params = [{}, {pipeline_mode = #tpu.pipeline_mode<synchronous>, transform_indices = @transform_1, window_bounds = array<i64: 128, 128>}, {transform_indices = @transform_2, window_bounds = array<i64: 1, 128, 128>}, {transform_indices = @transform_3, window_bounds = array<i64: 1, 1, 128>}, {transform_indices = @transform_4, window_bounds = array<i64: 128, 128>}]} {
    %c2_i32 = arith.constant 2 : i32
    %0 = arith.cmpi eq, %arg0, %c2_i32 : i32
    %c128_i32 = arith.constant 128 : i32
    %1 = arith.muli %arg1, %c128_i32 : i32
    %2 = tpu.assume_multiple %1, 128 : i32
    %c0_i32 = arith.constant 0 : i32
    %3 = arith.cmpi eq, %arg0, %c0_i32 : i32
    %c0_i32_0 = arith.constant 0 : i32
    %4 = arith.cmpi eq, %arg1, %c0_i32_0 : i32
    %5 = arith.andi %3, %4 : i1
    %6 = arith.extui %5 : i1 to i32
    %c0_i32_1 = arith.constant 0 : i32
    %7 = arith.cmpi ne, %6, %c0_i32_1 : i32
    scf.if %7 {
      tpu.enqueue_dma source(%arg2 : memref<128x128xbf16, #tpu.memory_space<any>>) target(%arg9 : memref<128x128xbf16, #tpu.memory_space<vmem>>) target_semaphore(%arg10 : memref<!tpu.dma_semaphore, #tpu.memory_space<semaphore_mem>>)
      %c0_12 = arith.constant 0 : index
      %c0_13 = arith.constant 0 : index
      %26 = vector.load %arg3[%c0_12, %c0_13] : memref<128x128xbf16, #tpu.memory_space<vmem>>, vector<128x128xbf16>
      %c0_14 = arith.constant 0 : index
      %c0_15 = arith.constant 0 : index
      %c0_16 = arith.constant 0 : index
      %27 = vector.load %arg4[%c0_14, %c0_15, %c0_16] : memref<1x128x128xbf16, #tpu.memory_space<vmem>>, vector<1x128x128xbf16>
      %28 = vector.shape_cast %27 : vector<1x128x128xbf16> to vector<128x128xbf16>
      %cst_17 = arith.constant dense<0.000000e+00> : vector<128x128xf32>
      %29 = tpu.matmul %26, %28, %cst_17 {dimension_numbers = #tpu.dot_dimension_numbers<[1], [0], [0], [1], [0, 0, 1, 1], [], []>} : vector<128x128xbf16>, vector<128x128xbf16>, vector<128x128xf32> -> vector<128x128xf32>
      %30 = arith.truncf %29 : vector<128x128xf32> to vector<128x128xbf16>
      %c0_18 = arith.constant 0 : index
      %c0_19 = arith.constant 0 : index
      %31 = vector.load %arg8[%c0_18, %c0_19] : memref<128x128xbf16, #tpu.memory_space<vmem>>, vector<128x128xbf16>
      tpu.vector_store %arg8[%c0_18, %c0_19], %30 {strides = array<i32>} : memref<128x128xbf16, #tpu.memory_space<vmem>>, vector<128x128xbf16>,
      tpu.wait_dma2 semaphore(%arg10 : memref<!tpu.dma_semaphore, #tpu.memory_space<semaphore_mem>>) src(%arg2 : memref<128x128xbf16, #tpu.memory_space<any>>) dst(%arg9 : memref<128x128xbf16, #tpu.memory_space<vmem>>)
    } else {
    }
    %c0_i32_2 = arith.constant 0 : i32
    %8 = arith.cmpi sgt, %arg0, %c0_i32_2 : i32
    %c0_i32_3 = arith.constant 0 : i32
    %9 = arith.cmpi eq, %arg1, %c0_i32_3 : i32
    %10 = arith.andi %8, %9 : i1
    %11 = arith.extui %10 : i1 to i32
    %c0_i32_4 = arith.constant 0 : i32
    %12 = arith.cmpi ne, %11, %c0_i32_4 : i32
    scf.if %12 {
      %c0_12 = arith.constant 0 : index
      %c0_13 = arith.constant 0 : index
      %26 = vector.load %arg7[%c0_12, %c0_13] : memref<128x128xbf16, #tpu.memory_space<vmem>>, vector<128x128xbf16>
      %c0_14 = arith.constant 0 : index
      %c0_15 = arith.constant 0 : index
      %c0_16 = arith.constant 0 : index
      %27 = vector.load %arg4[%c0_14, %c0_15, %c0_16] : memref<1x128x128xbf16, #tpu.memory_space<vmem>>, vector<1x128x128xbf16>
      %28 = vector.shape_cast %27 : vector<1x128x128xbf16> to vector<128x128xbf16>
      %cst_17 = arith.constant dense<0.000000e+00> : vector<128x128xf32>
      %29 = tpu.matmul %26, %28, %cst_17 {dimension_numbers = #tpu.dot_dimension_numbers<[1], [0], [0], [1], [0, 0, 1, 1], [], []>} : vector<128x128xbf16>, vector<128x128xbf16>, vector<128x128xf32> -> vector<128x128xf32>
      %30 = arith.truncf %29 : vector<128x128xf32> to vector<128x128xbf16>
      %c0_18 = arith.constant 0 : index
      %c0_19 = arith.constant 0 : index
      %31 = vector.load %arg8[%c0_18, %c0_19] : memref<128x128xbf16, #tpu.memory_space<vmem>>, vector<128x128xbf16>
      tpu.vector_store %arg8[%c0_18, %c0_19], %30 {strides = array<i32>} : memref<128x128xbf16, #tpu.memory_space<vmem>>, vector<128x128xbf16>,
    } else {
    }
    %13 = arith.index_cast %2 : i32 to index
    %c0 = arith.constant 0 : index
    %14 = vector.load %arg9[%13, %c0] : memref<128x128xbf16, #tpu.memory_space<vmem>>, vector<128x128xbf16>
    %c0_5 = arith.constant 0 : index
    %c0_6 = arith.constant 0 : index
    %15 = vector.load %arg8[%c0_5, %c0_6] : memref<128x128xbf16, #tpu.memory_space<vmem>>, vector<128x128xbf16>
    %cst = arith.constant dense<0.000000e+00> : vector<128x128xf32>
    %16 = tpu.matmul %14, %15, %cst {dimension_numbers = #tpu.dot_dimension_numbers<[1], [0], [0], [1], [0, 0, 1, 1], [], []>} : vector<128x128xbf16>, vector<128x128xbf16>, vector<128x128xf32> -> vector<128x128xf32>
    %c0_7 = arith.constant 0 : index
    %c0_8 = arith.constant 0 : index
    %c0_9 = arith.constant 0 : index
    %17 = vector.load %arg5[%c0_7, %c0_8, %c0_9] : memref<1x1x128xf32, #tpu.memory_space<vmem>>, vector<1x1x128xf32>
    %18 = vector.shape_cast %17 : vector<1x1x128xf32> to vector<1x128xf32>
    %19 = vector.broadcast %18 : vector<1x128xf32> to vector<128x128xf32>
    %20 = arith.addf %16, %19 : vector<128x128xf32>
    %true = arith.constant true
    %21 = arith.xori %0, %true : i1
    %22 = arith.extui %21 : i1 to i32
    %c0_i32_10 = arith.constant 0 : i32
    %23 = arith.cmpi ne, %22, %c0_i32_10 : i32
    scf.if %23 {
      %cst_12 = arith.constant 0.000000e+00 : f32
      %26 = vector.broadcast %cst_12 : f32 to vector<128x128xf32>
      %27 = arith.maximumf %20, %26 : vector<128x128xf32>
      %28 = arith.truncf %27 : vector<128x128xf32> to vector<128x128xbf16>
      %29 = arith.index_cast %2 : i32 to index
      %c0_13 = arith.constant 0 : index
      %30 = vector.load %arg7[%29, %c0_13] : memref<128x128xbf16, #tpu.memory_space<vmem>>, vector<128x128xbf16>
      tpu.vector_store %arg7[%29, %c0_13], %28 {strides = array<i32>} : memref<128x128xbf16, #tpu.memory_space<vmem>>, vector<128x128xbf16>,
    } else {
    }
    %24 = arith.extui %0 : i1 to i32
    %c0_i32_11 = arith.constant 0 : i32
    %25 = arith.cmpi ne, %24, %c0_i32_11 : i32
    scf.if %25 {
      %c0_12 = arith.constant 0 : index
      %c0_13 = arith.constant 0 : index
      %26 = vector.load %arg6[%c0_12, %c0_13] : memref<128x128xf32, #tpu.memory_space<vmem>>, vector<128x128xf32>
      tpu.vector_store %arg6[%c0_12, %c0_13], %20 {strides = array<i32>} : memref<128x128xf32, #tpu.memory_space<vmem>>, vector<128x128xf32>,
    } else {
    }
    return
  }
  func.func @transform_1(%arg0: i32, %arg1: i32) -> (i32, i32) {
    %c0_i32 = arith.constant 0 : i32
    %c0_i32_0 = arith.constant 0 : i32
    %c0_i32_1 = arith.constant 0 : i32
    return %c0_i32, %c0_i32_0 : i32, i32
  }
  func.func @transform_2(%arg0: i32, %arg1: i32) -> (i32, i32, i32) {
    %c0_i32 = arith.constant 0 : i32
    %c0_i32_0 = arith.constant 0 : i32
    %c0_i32_1 = arith.constant 0 : i32
    return %arg0, %c0_i32, %c0_i32_0 : i32, i32, i32
  }
  func.func @transform_3(%arg0: i32, %arg1: i32) -> (i32, i32, i32) {
    %c0_i32 = arith.constant 0 : i32
    %c0_i32_0 = arith.constant 0 : i32
    %c0_i32_1 = arith.constant 0 : i32
    return %arg0, %c0_i32, %c0_i32_0 : i32, i32, i32
  }
  func.func @transform_4(%arg0: i32, %arg1: i32) -> (i32, i32) {
    %c2_i32 = arith.constant 2 : i32
    %0 = arith.cmpi eq, %arg0, %c2_i32 : i32
    %c0_i32 = arith.constant 0 : i32
    %1 = arith.select %0, %arg1, %c0_i32 : i32
    %c0_i32_0 = arith.constant 0 : i32
    %c0_i32_1 = arith.constant 0 : i32
    return %1, %c0_i32_0 : i32, i32
  }
}

</mosaic_0001>

<bundles_post_ra>
// kernel: tpu_custom_call.1
= control target key start
LH: loop header
LB: loop body
LE: loop exit
PB: predicated region body
PF: predicated region fallthrough
CT: control target
= control target key end

     0   :  { %9 = vsyncpa [#allocation7], 0  ;;  %s1808_s0 = inlined_call_operand.hbm [shape: bf16[128,128], index: 0, kind: input, shape index: {}]   ;;  %s1809_s1 = inlined_call_operand.hbm [shape: bf16[128,128], index: 1, kind: input, shape index: {}]   ;;  %s1810_s2 = inlined_call_operand.hbm [shape: bf16[3,128,128], index: 2, kind: input, shape index: {}]   ;;  %s1811_s3 = inlined_call_operand.vmem [shape: f32[3,1,128], index: 3, kind: input, shape index: {}]   ;;  %s1812_s4 = inlined_call_operand.hbm [shape: f32[128,128], index: 4, kind: output, shape index: {}]  }
   0x1   :  { %10 = vsyncpa [#allocation10], 0 }
   0x2   :  { %12 = vsyncpa [#allocation10 + $0x1], 0 }
   0x3   :  { %13 = vsyncpa [#allocation8], 0 }
   0x4   :  { %15 = vsyncpa [#allocation8 + $0x1], 0  ;;  %s1550_s15 = smov 0   ;;  %s1552_s16 = smov 0  }
   0x5   :  { %s1554_s17 = smov 0   ;;  %s1556_s18 = smov 0  }
   0x6   :  { %s1558_s19 = smov 0   ;;  %s1560_s20 = smov 0  }
   0x7 LB: > { %s1002_s21 = sadd.s32 4294967295, %s1515_s20   ;;  %s1003_s22 = sadd.s32 4294967294, %s1515_s20   ;;  %s1515_s20 = sphi %s1560_s20, %s21_s20   ;;  %s1511_s19 = sphi %s1558_s19, %s1831_s19   ;;  %s1507_s18 = sphi %s1556_s18, %s1830_s18   ;;  %s1503_s17 = sphi %s1554_s17, %s1829_s17   ;;  %s1499_s16 = sphi %s1552_s16, %s1828_s16   ;;  %s1495_s15 = sphi %s1550_s15, %s1827_s15  }
   0x8   : > { %p74_p0 = scmp.ne.s32.totalorder %s1499_s16, %s1495_s15  ;;  %p1583_p1 = scmp.eq.s32.totalorder %s1002_s21, 0 }
   0x9   : > { %p1004_p2 = scmp.ge.s32.totalorder %s1515_s20, 1  ;;  %p141_p3 = scmp.lt.s32.totalorder %s1515_s20, 4 }
   0xa   : > { %s1817_s23 = scalar_select %p1583_p1, 1, 0 }
   0xb   : > { %p1591_p4 = por %p1583_p1, %p74_p0  ;;  %p1595_p5 = pnand %p1004_p2, %p141_p3 }
   0xc   : > { %s1517_s26 = smov [#allocation6]   ;;  %s1349_s5 = scalar_lea.hbm %s1809_s1, 1024 }
   0xd   : > { %s1818_s24 = scalar_select %p1591_p4, 1, 0 }
   0xe   : > { %s1819_s25 = scalar_select %p1595_p5, 1, 0 }
   0xf   : > { %s153_s27 = sshll.u32 %s1517_s26, 4  ;;  %p1252_p6 = pneg %p1595_p5  ;;  %s154_s27 = int_to_ptr.vmem [resolvable:$true] %s153_s27 }
  0x10   : > { %p1350_p8 = scmp.ne.s32.totalorder %s1809_s1, %s1349_s5  ;;  %p1356_p12 = scmp.lt.u32.totalorder %s1349_s5, %s1809_s1 }
  0x11   : > { %p1603_p7 = pnand %p1252_p6, %p1583_p1 }
  0x13   : > { %p1351_p9 = pneg %p1603_p7 }
  0x15   : > { %p1352_p10 = pnand %p1351_p9, %p1350_p8 }
  0x17   : > { %p1353_p11 = pneg %p1352_p10 }
  0x19   : > { %p1358_p13 = pnand %p1356_p12, %p1353_p11 }
  0x1b   : > { %1361 = shalt.err (!%p1358_p13)
}
  0x1c   : > { %s1362_s10 = scalar_lea.vmem %s154_s27, 1024  ;;  %p1370_p6 = scmp.lt.s32.totalorder %s154_s27, %s154_s27 }
  0x1d   : > { %p1363_p0 = scmp.ne.s32.totalorder %s154_s27, %s1362_s10  ;;  %p1371_p4 = scmp.lt.s32.totalorder %s1362_s10, %s1362_s10 }
  0x1f   : > { %p1365_p2 = pnand %p1363_p0, %p1351_p9  ;;  %p1372_p1 = por %p1371_p4, %p1370_p6 }
  0x21   : > { %p1366_p3 = pneg %p1365_p2 }
  0x23   : > { %p1373_p5 = pnand %p1372_p1, %p1366_p3 }
  0x25   : > { %1376 = shalt.err (!%p1373_p5)
}
  0x26   : > { %s1518_s11 = smov 64   ;;  %s1519_s12 = smov 4  }
  0x27   : > { %1255 = dma.hbm_to_vmem [thread:$0]  (!%p1603_p7), %s1809_s1, 1024, %s154_s27, [#allocation7], %s1518_s11, %s1518_s11, %s1519_s12  }
  0x28   : > { %s33_s15 = sadd.s32 1, %s1511_s19  ;;  %s61_s26 = sadd.s32 1, %s1503_s17 }
  0x29   : > { %p35_p1 = scmp.ge.s32.totalorder %s33_s15, 3  ;;  %p68_p4 = scmp.ne.s32.totalorder %s1503_s17, %s1499_s16 }
  0x2a   : > { %p69_p5 = scmp.eq.s32.totalorder %s1515_s20, 0  ;;  %p1265_p8 = scmp.lt.s32.totalorder %s1515_s20, 3 }
  0x2b   : > { %s1833_s15 = smov (%p35_p1, %s33_s15), 0  ;;  %s167_s29 = sand.u32 1, %s1503_s17  }
  0x2c   : > { %p70_p9 = por %p69_p5, %p68_p4  ;;  %s58_s28 = ssub.s32 %s1511_s19, %s1833_s15 }
  0x2d   : > { %p59_p10 = scmp.eq.s32.totalorder %s58_s28, 0  ;;  %s1007_s30 = sshll.u32 %s167_s29, 6 }
  0x2e   : > { %s1047_s5 = sshll.u32 %s1511_s19, 10  ;;  %s171_s9 = scalar_lea.vmem [#allocation9], %s1007_s30 }
  0x2f   : > { %s1639_s6 = scalar_select %p59_p10, %s1503_s17, %s61_s26  }
  0x30   : > { %s1644_s8 = scalar_lea.hbm %s1810_s2, %s1047_s5  ;;  %s178_s10 = sshll.u32 %s171_s9, 4  ;;  %s1646_s10 = int_to_ptr.vmem [resolvable:$true] %s178_s10 }
  0x31   : > { %p1650_p7 = pnand %p1265_p8, %p70_p9  ;;  %s1654_s14 = scalar_lea.sflag [#allocation10], %s167_s29 }
  0x32   : > { %s1377_s26 = scalar_lea.hbm %s1644_s8, 1024  ;;  %s1382_s5 = scalar_lea.hbm %s1810_s2, 3072 }
  0x33   : > { %p1378_p11 = scmp.ne.s32.totalorder %s1644_s8, %s1377_s26  ;;  %p1379_p12 = pneg %p1650_p7 }
  0x34   : > { %p1383_p2 = scmp.lt.u32.totalorder %s1644_s8, %s1810_s2  ;;  %p1384_p3 = scmp.lt.u32.totalorder %s1382_s5, %s1377_s26 }
  0x35   : > { %p1380_p13 = pnand %p1379_p12, %p1378_p11  ;;  %p1386_p1 = scmp.lt.u32.totalorder %s1377_s26, %s1644_s8 }
  0x36   : > { %p1385_p6 = por %p1384_p3, %p1383_p2 }
  0x37   : > { %p1381_p0 = pneg %p1380_p13 }
  0x38   : > { %p1387_p4 = por %p1386_p1, %p1385_p6 }
  0x3a   : > { %p1388_p5 = pnand %p1387_p4, %p1381_p0 }
  0x3c   : > { %1391 = shalt.err (!%p1388_p5)
}
  0x3d   : > { %s1392_s29 = scalar_lea.vmem %s1646_s10, 1024  ;;  %s1520_s9 = smov [#allocation9]  }
  0x3e   : > { %p1393_p8 = scmp.ne.s32.totalorder %s1646_s10, %s1392_s29  ;;  %s1397_s28 = sshll.u32 %s1520_s9, 4  ;;  %s1398_s28 = int_to_ptr.vmem [resolvable:$false] %s1397_s28 }
  0x3f   : > { %s1399_s30 = scalar_lea.vmem %s1398_s28, 2048  ;;  %p1400_p11 = scmp.lt.s32.totalorder %s1646_s10, %s1398_s28 }
  0x40   : > { %p1395_p9 = pnand %p1393_p8, %p1379_p12  ;;  %p1401_p13 = scmp.lt.s32.totalorder %s1399_s30, %s1392_s29 }
  0x42   : > { %p1396_p10 = pneg %p1395_p9  ;;  %p1402_p2 = por %p1401_p13, %p1400_p11 }
  0x44   : > { %p1403_p3 = pnand %p1402_p2, %p1396_p10 }
  0x46   : > { %1406 = shalt.err (!%p1403_p3)
}
  0x47   : > { %1259 = dma.hbm_to_vmem [thread:$0]  (!%p1650_p7), %s1644_s8, 1024, %s1646_s10, %s1654_s14, %s1518_s11, %s1518_s11, %s1519_s12  }
  0x48   : > { %p1822_p12 = scmp.ne.s32.totalorder %s1819_s25, 0 }
  0x49   : > { %p1823_p0 = scmp.ne.s32.totalorder (!%p1822_p12), %s1817_s23, 0 }
  0x4a   : > { %196 = sbr.rel (%p1822_p12) target bundleno = 905 (0x389), region = 32 }
  0x51   : > { %1480 = dma.done.wait (%p1823_p0), [#allocation7], 1024  }
  0x52   : > { %1482 = vsyncadd (%p1823_p0), [#allocation7], 4294966272  ;;  %s202_s26 = sand.u32 1, %s1499_s16   ;;  %p1824_p6 = scmp.ne.s32.totalorder %s1818_s24, 0 }
  0x53   : > { %s1012_s13 = sshll.u32 %s202_s26, 6  ;;  %s203_s5 = scalar_lea.sflag [#allocation10], %s202_s26 }
  0x54   : > { %s1692_s7 = scalar_lea.vmem [#allocation9], %s1012_s13 }
  0x55   : > { %1484 = dma.done.wait (%p1824_p6), %s203_s5, 1024  }
  0x56   : > { %1486 = vsyncadd (%p1824_p6), %s203_s5, 4294966272  ;;  %p232_p7 = scmp.lt.s32.totalorder %s1507_s18, 2  ;;  %p241_p1 = scmp.eq.s32.totalorder %s1507_s18, 0 }
  0x57   : > { %v1325_v0 = vld [vmem:[%s1692_s7] sm:$0xff] (%p241_p1)   ;;  %v1326_v1 = vld [vmem:[%s1692_s7 + $0x8] sm:$0xff] (%p241_p1)   ;;  %v1327_v2 = vld [vmem:[%s1692_s7 + $0x10] sm:$0xff] (%p241_p1)   ;;  %s1521_s24 = smov (%p241_p1), [#allocation4]   ;;  %s1407_s27 = scalar_lea.hbm (%p241_p1), %s1808_s0, 1024 }
  0x58   : > { %s1701_s25 = scalar_select %p232_p7, %s1507_s18, 2 }
  0x59   : > { %246 = sbr.rel (!%p241_p1) target bundleno = 349 (0x15d), region = 44  ;;  %1098 = vmatprep.subr.bf16.mxu0 (%p241_p1), %v1325_v0  ;;  %1194 = vmatprep.subr.bf16.mxu1 (%p241_p1), %v1325_v0  ;;  %v1328_v3 = vld [vmem:[%s1692_s7 + $0x18] sm:$0xff] (%p241_p1)   ;;  %v1333_v4 = vld [vmem:[#allocation6] sm:$0xff] (%p241_p1)   ;;  %v1330_v7 = vld [vmem:[%s1692_s7 + $0x28] sm:$0xff] (%p241_p1)   ;;  %s254_s8 = sshll.u32 (%p241_p1), %s1521_s24, 4  ;;  %s255_s8 = int_to_ptr.vmem [resolvable:$true] %s254_s8 }
  0x5a   : > { %s234_s12 = scalar_lea.vmem %s1811_s3, %s1701_s25  ;;  %1099 = vmatpush3.bf16.msra.mxu0 (%p241_p1), %v1325_v0  ;;  %1202 = vmatpush3.bf16.msra.mxu1 (%p241_p1), %v1325_v0  ;;  %v1334_v5 = vld [vmem:[#allocation6 + $0x20] sm:$0xff] (%p241_p1)   ;;  %v1331_v8 = vld [vmem:[%s1692_s7 + $0x30] sm:$0xff] (%p241_p1)   ;;  %v1332_v9 = vld [vmem:[%s1692_s7 + $0x38] sm:$0xff] (%p241_p1)   ;;  %p1408_p4 = scmp.ne.s32.totalorder (%p241_p1), %s1808_s0, %s1407_s27 }
  0x5b   : > { %1100 = vmatprep.subr.bf16.mxu0 (%p241_p1), %v1326_v1  ;;  %1195 = vmatprep.subr.bf16.mxu1 (%p241_p1), %v1326_v1  ;;  %v1329_v6 = vld [vmem:[%s1692_s7 + $0x20] sm:$0xff] (%p241_p1)   ;;  %v1335_v10 = vld [vmem:[#allocation6 + $0x8] sm:$0xff] (%p241_p1)   ;;  %v1337_v12 = vld [vmem:[#allocation6 + $0x10] sm:$0xff] (%p241_p1)   ;;  %p1411_p5 = scmp.lt.u32.totalorder (%p241_p1), %s1407_s27, %s1808_s0 }
  0x5c   : > { %1114 = vmatprep.mubr.bf16.mxu0 (%p241_p1), %v1333_v4  ;;  %1122 = vmatprep.mubr.bf16.mxu1 (%p241_p1), %v1334_v5  ;;  %v1336_v11 = vld [vmem:[#allocation6 + $0x28] sm:$0xff] (%p241_p1)   ;;  %v1338_v13 = vld [vmem:[#allocation6 + $0x30] sm:$0xff] (%p241_p1)   ;;  %v1339_v14 = vld [vmem:[#allocation6 + $0x18] sm:$0xff] (%p241_p1)  }
  0x5d   : > { %v1340_v15 = vld [vmem:[#allocation6 + $0x38] sm:$0xff] (%p241_p1)   ;;  %p1413_p8 = pnand (%p241_p1), %p1411_p5, %p1408_p4 }
  0x5e   : > { %1101 = vmatpush3.bf16.msra.mxu0 (%p241_p1), %v1326_v1  ;;  %1203 = vmatpush3.bf16.msra.mxu1 (%p241_p1), %v1326_v1 }
  0x5f   : > { %1102 = vmatprep.subr.bf16.mxu0 (%p241_p1), %v1327_v2  ;;  %1196 = vmatprep.subr.bf16.mxu1 (%p241_p1), %v1327_v2 }
  0x62   : > { %1103 = vmatpush3.bf16.msra.mxu0 %v1327_v2  ;;  %1204 = vmatpush3.bf16.msra.mxu1 %v1327_v2 }
  0x63   : > { %1104 = vmatprep.subr.bf16.mxu0 %v1328_v3  ;;  %1197 = vmatprep.subr.bf16.mxu1 %v1328_v3 }
  0x66   : > { %1105 = vmatpush3.bf16.msra.mxu0 %v1328_v3  ;;  %1205 = vmatpush3.bf16.msra.mxu1 %v1328_v3 }
  0x67   : > { %1106 = vmatprep.subr.bf16.mxu0 %v1329_v6  ;;  %1198 = vmatprep.subr.bf16.mxu1 %v1329_v6 }
  0x6a   : > { %1107 = vmatpush3.bf16.msra.mxu0 %v1329_v6  ;;  %1206 = vmatpush3.bf16.msra.mxu1 %v1329_v6 }
  0x6b   : > { %1108 = vmatprep.subr.bf16.mxu0 %v1330_v7  ;;  %1199 = vmatprep.subr.bf16.mxu1 %v1330_v7 }
  0x6e   : > { %1109 = vmatpush3.bf16.msra.mxu0 %v1330_v7  ;;  %1207 = vmatpush3.bf16.msra.mxu1 %v1330_v7 }
  0x6f   : > { %1110 = vmatprep.subr.bf16.mxu0 %v1331_v8  ;;  %1200 = vmatprep.subr.bf16.mxu1 %v1331_v8 }
  0x72   : > { %1111 = vmatpush3.bf16.msra.mxu0 %v1331_v8  ;;  %1208 = vmatpush3.bf16.msra.mxu1 %v1331_v8 }
  0x73   : > { %1112 = vmatprep.subr.bf16.mxu0 %v1332_v9  ;;  %1201 = vmatprep.subr.bf16.mxu1 %v1332_v9 }
  0x76   : > { %1113 = vmatpush3.bf16.msra.mxu0 %v1332_v9  ;;  %1209 = vmatpush3.bf16.msra.mxu1 %v1332_v9 }
  0x79   : > { %1115 = vmatmul.mubr.bf16.vlgmr.msra.gmra.mrb[0].mxu0 %v1335_v10  ;;  %1123 = vmatmul.mubr.bf16.vlgmr.msra.gmra.mrb[0].mxu1 %v1336_v11 }
  0x7a   : > { %1118 = vmatprep.mubr.bf16.mxu0 %v1337_v12  ;;  %1126 = vmatprep.mubr.bf16.mxu1 %v1338_v13 }
  0x81   : > { %1119 = vmatmul.mubr.bf16.gmra.mrb[4].mxu0 %v1339_v14  ;;  %1127 = vmatmul.mubr.bf16.gmra.mrb[4].mxu1 %v1340_v15 }
  0x82   : > { %1416 = shalt.err (!%p1413_p8)  }
  0x83   : > { %s1417_s26 = scalar_lea.vmem %s255_s8, 1024  ;;  %p1422_p10 = scmp.lt.s32.totalorder %s255_s8, %s255_s8 }
  0x84   : > { %p1418_p9 = scmp.ne.s32.totalorder %s255_s8, %s1417_s26  ;;  %p1423_p11 = scmp.lt.s32.totalorder %s1417_s26, %s1417_s26 }
  0x86   : > { %p1424_p13 = por %p1423_p11, %p1422_p10 }
  0x88   : > { %p1425_p2 = pnand %p1424_p13, %p1418_p9 }
  0x8a   : > { %1428 = shalt.err (!%p1425_p2)  }
  0x8b   : > { %257 = dma.hbm_to_vmem [thread:$0]  %s1808_s0, 1024, %s255_s8, [#allocation5] }
 0x14c   : > { %v1116_v16 = vpop.f32.mrb[0].mxu0  ;;  %v1124_v17 = vpop.f32.mrb[0].mxu1 }
 0x14d   : > { %v420_v18 = vpop.f32.mrb[1].mxu0  ;;  %v452_v19 = vpop.f32.mrb[1].mxu1 }
 0x14e   : > { %v1117_v20 = vpop.f32.mrb[2].mxu0  ;;  %v1125_v21 = vpop.f32.mrb[2].mxu1 }
 0x14f   : > { %v484_v22 = vpack.c.bf16 %v1117_v20, %v1116_v16  ;;  %v488_v23 = vpack.c.bf16 %v1125_v21, %v1124_v17  ;;  %v423_v24 = vpop.f32.mrb[3].mxu0  ;;  %v455_v25 = vpop.f32.mrb[3].mxu1 }
 0x150   : > { %v483_v26 = vpack.c.bf16 %v423_v24, %v420_v18  ;;  %v487_v27 = vpack.c.bf16 %v455_v25, %v452_v19 }
 0x151   : > { %492 = vst [vmem:[#allocation3 + $0x8] sm:$0xff] %v484_v22  ;;  %496 = vst [vmem:[#allocation3 + $0x28] sm:$0xff] %v488_v23 }
 0x152   : > { %491 = vst [vmem:[#allocation3] sm:$0xff] %v483_v26  ;;  %495 = vst [vmem:[#allocation3 + $0x20] sm:$0xff] %v487_v27 }
 0x154   : > { %v1120_v28 = vpop.f32.mrb[4].mxu0  ;;  %v1128_v29 = vpop.f32.mrb[4].mxu1 }
 0x155   : > { %v436_v30 = vpop.f32.mrb[5].mxu0  ;;  %v468_v31 = vpop.f32.mrb[5].mxu1 }
 0x156   : > { %v1121_v32 = vpop.f32.mrb[6].mxu0  ;;  %v1129_v33 = vpop.f32.mrb[6].mxu1 }
 0x157   : > { %v486_v34 = vpack.c.bf16 %v1121_v32, %v1120_v28  ;;  %v490_v35 = vpack.c.bf16 %v1129_v33, %v1128_v29  ;;  %v439_v36 = vpop.f32.mrb[7].mxu0  ;;  %v471_v37 = vpop.f32.mrb[7].mxu1 }
 0x158   : > { %v485_v38 = vpack.c.bf16 %v439_v36, %v436_v30  ;;  %v489_v39 = vpack.c.bf16 %v471_v37, %v468_v31 }
 0x159   : > { %494 = vst [vmem:[#allocation3 + $0x18] sm:$0xff] %v486_v34  ;;  %498 = vst [vmem:[#allocation3 + $0x38] sm:$0xff] %v490_v35 }
 0x15a   : > { %493 = vst [vmem:[#allocation3 + $0x10] sm:$0xff] %v485_v38  ;;  %497 = vst [vmem:[#allocation3 + $0x30] sm:$0xff] %v489_v39 }
 0x15b   : > { %1487 = dma.done.wait [#allocation5], 1024 }
 0x15c   : > { %1488 = vsyncadd [#allocation5], 4294966272 }
 0x15d PF: > { %p503_p3 = scmp.gt.s32.totalorder %s1507_s18, 0 }
 0x15e   : > { %v1341_v40 = vld [vmem:[%s1692_s7] sm:$0xff] (%p503_p3)   ;;  %v1342_v41 = vld [vmem:[%s1692_s7 + $0x8] sm:$0xff] (%p503_p3)   ;;  %v1343_v42 = vld [vmem:[%s1692_s7 + $0x10] sm:$0xff] (%p503_p3)  }
 0x15f   : > { %507 = sbr.rel (!%p503_p3) target bundleno = 609 (0x261), region = 52  ;;  %1130 = vmatprep.subr.bf16.mxu0 (%p503_p3), %v1341_v40  ;;  %1210 = vmatprep.subr.bf16.mxu1 (%p503_p3), %v1341_v40  ;;  %v1344_v43 = vld [vmem:[%s1692_s7 + $0x18] sm:$0xff] (%p503_p3)   ;;  %v508_v44 = vld [vmem:[#allocation2] sm:$0xff] (%p503_p3)  ;;  %v1346_v47 = vld [vmem:[%s1692_s7 + $0x28] sm:$0xff] (%p503_p3)  }
 0x160   : > { %1131 = vmatpush3.bf16.msra.mxu0 (%p503_p3), %v1341_v40  ;;  %1218 = vmatpush3.bf16.msra.mxu1 (%p503_p3), %v1341_v40  ;;  %v512_v45 = vld [vmem:[#allocation2 + $0x20] sm:$0xff] (%p503_p3)  ;;  %v1347_v48 = vld [vmem:[%s1692_s7 + $0x30] sm:$0xff] (%p503_p3)   ;;  %v1348_v49 = vld [vmem:[%s1692_s7 + $0x38] sm:$0xff] (%p503_p3)  }
 0x161   : > { %1132 = vmatprep.subr.bf16.mxu0 (%p503_p3), %v1342_v41  ;;  %1211 = vmatprep.subr.bf16.mxu1 (%p503_p3), %v1342_v41  ;;  %v1345_v46 = vld [vmem:[%s1692_s7 + $0x20] sm:$0xff] (%p503_p3)   ;;  %v509_v50 = vld [vmem:[#allocation2 + $0x8] sm:$0xff] (%p503_p3)  ;;  %v510_v52 = vld [vmem:[#allocation2 + $0x10] sm:$0xff] (%p503_p3) }
 0x162   : > { %1146 = vmatprep.mubr.bf16.mxu0 (%p503_p3), %v508_v44  ;;  %1154 = vmatprep.mubr.bf16.mxu1 (%p503_p3), %v512_v45  ;;  %v513_v51 = vld [vmem:[#allocation2 + $0x28] sm:$0xff] (%p503_p3)  ;;  %v514_v53 = vld [vmem:[#allocation2 + $0x30] sm:$0xff] (%p503_p3)  ;;  %v511_v54 = vld [vmem:[#allocation2 + $0x18] sm:$0xff] (%p503_p3) }
 0x163   : > { %v515_v55 = vld [vmem:[#allocation2 + $0x38] sm:$0xff] (%p503_p3) }
 0x164   : > { %1133 = vmatpush3.bf16.msra.mxu0 (%p503_p3), %v1342_v41  ;;  %1219 = vmatpush3.bf16.msra.mxu1 (%p503_p3), %v1342_v41 }
 0x165   : > { %1134 = vmatprep.subr.bf16.mxu0 (%p503_p3), %v1343_v42  ;;  %1212 = vmatprep.subr.bf16.mxu1 (%p503_p3), %v1343_v42 }
 0x168   : > { %1135 = vmatpush3.bf16.msra.mxu0 %v1343_v42  ;;  %1220 = vmatpush3.bf16.msra.mxu1 %v1343_v42 }
 0x169   : > { %1136 = vmatprep.subr.bf16.mxu0 %v1344_v43  ;;  %1213 = vmatprep.subr.bf16.mxu1 %v1344_v43 }
 0x16c   : > { %1137 = vmatpush3.bf16.msra.mxu0 %v1344_v43  ;;  %1221 = vmatpush3.bf16.msra.mxu1 %v1344_v43 }
 0x16d   : > { %1138 = vmatprep.subr.bf16.mxu0 %v1345_v46  ;;  %1214 = vmatprep.subr.bf16.mxu1 %v1345_v46 }
 0x170   : > { %1139 = vmatpush3.bf16.msra.mxu0 %v1345_v46  ;;  %1222 = vmatpush3.bf16.msra.mxu1 %v1345_v46 }
 0x171   : > { %1140 = vmatprep.subr.bf16.mxu0 %v1346_v47  ;;  %1215 = vmatprep.subr.bf16.mxu1 %v1346_v47 }
 0x174   : > { %1141 = vmatpush3.bf16.msra.mxu0 %v1346_v47  ;;  %1223 = vmatpush3.bf16.msra.mxu1 %v1346_v47 }
 0x175   : > { %1142 = vmatprep.subr.bf16.mxu0 %v1347_v48  ;;  %1216 = vmatprep.subr.bf16.mxu1 %v1347_v48 }
 0x178   : > { %1143 = vmatpush3.bf16.msra.mxu0 %v1347_v48  ;;  %1224 = vmatpush3.bf16.msra.mxu1 %v1347_v48 }
 0x179   : > { %1144 = vmatprep.subr.bf16.mxu0 %v1348_v49  ;;  %1217 = vmatprep.subr.bf16.mxu1 %v1348_v49 }
 0x17c   : > { %1145 = vmatpush3.bf16.msra.mxu0 %v1348_v49  ;;  %1225 = vmatpush3.bf16.msra.mxu1 %v1348_v49 }
 0x17f   : > { %1147 = vmatmul.mubr.bf16.vlgmr.msra.gmra.mrb[0].mxu0 %v509_v50  ;;  %1155 = vmatmul.mubr.bf16.vlgmr.msra.gmra.mrb[0].mxu1 %v513_v51 }
 0x180   : > { %1150 = vmatprep.mubr.bf16.mxu0 %v510_v52  ;;  %1158 = vmatprep.mubr.bf16.mxu1 %v514_v53 }
 0x187   : > { %1151 = vmatmul.mubr.bf16.gmra.mrb[4].mxu0 %v511_v54  ;;  %1159 = vmatmul.mubr.bf16.gmra.mrb[4].mxu1 %v515_v55 }
 0x252   : > { %v1148_v56 = vpop.f32.mrb[0].mxu0  ;;  %v1156_v57 = vpop.f32.mrb[0].mxu1 }
 0x253   : > { %v614_v58 = vpop.f32.mrb[1].mxu0  ;;  %v646_v59 = vpop.f32.mrb[1].mxu1 }
 0x254   : > { %v1149_v60 = vpop.f32.mrb[2].mxu0  ;;  %v1157_v61 = vpop.f32.mrb[2].mxu1 }
 0x255   : > { %v678_v62 = vpack.c.bf16 %v1149_v60, %v1148_v56  ;;  %v682_v63 = vpack.c.bf16 %v1157_v61, %v1156_v57  ;;  %v617_v0 = vpop.f32.mrb[3].mxu0  ;;  %v649_v1 = vpop.f32.mrb[3].mxu1 }
 0x256   : > { %v677_v2 = vpack.c.bf16 %v617_v0, %v614_v58  ;;  %v681_v3 = vpack.c.bf16 %v649_v1, %v646_v59 }
 0x257   : > { %686 = vst [vmem:[#allocation3 + $0x8] sm:$0xff] %v678_v62  ;;  %690 = vst [vmem:[#allocation3 + $0x28] sm:$0xff] %v682_v63 }
 0x258   : > { %685 = vst [vmem:[#allocation3] sm:$0xff] %v677_v2  ;;  %689 = vst [vmem:[#allocation3 + $0x20] sm:$0xff] %v681_v3 }
 0x25a   : > { %v1152_v4 = vpop.f32.mrb[4].mxu0  ;;  %v1160_v5 = vpop.f32.mrb[4].mxu1 }
 0x25b   : > { %v630_v6 = vpop.f32.mrb[5].mxu0  ;;  %v662_v7 = vpop.f32.mrb[5].mxu1 }
 0x25c   : > { %v1153_v8 = vpop.f32.mrb[6].mxu0  ;;  %v1161_v9 = vpop.f32.mrb[6].mxu1 }
 0x25d   : > { %v680_v10 = vpack.c.bf16 %v1153_v8, %v1152_v4  ;;  %v684_v11 = vpack.c.bf16 %v1161_v9, %v1160_v5  ;;  %v633_v12 = vpop.f32.mrb[7].mxu0  ;;  %v665_v13 = vpop.f32.mrb[7].mxu1 }
 0x25e   : > { %v679_v14 = vpack.c.bf16 %v633_v12, %v630_v6  ;;  %v683_v15 = vpack.c.bf16 %v665_v13, %v662_v7 }
 0x25f   : > { %688 = vst [vmem:[#allocation3 + $0x18] sm:$0xff] %v680_v10  ;;  %692 = vst [vmem:[#allocation3 + $0x38] sm:$0xff] %v684_v11 }
 0x260   : > { %687 = vst [vmem:[#allocation3 + $0x10] sm:$0xff] %v679_v14  ;;  %691 = vst [vmem:[#allocation3 + $0x30] sm:$0xff] %v683_v15 }
 0x261 PF: > { %v705_v16 = vld [vmem:[#allocation3] sm:$0xff]  ;;  %v706_v17 = vld [vmem:[#allocation3 + $0x8] sm:$0xff]  ;;  %v699_v28 = vld [vmem:[#allocation4 + $0x10] sm:$0xff]  ;;  %p1040_p12 = scmp.eq.s32.totalorder %s1507_s18, 2 }
 0x262   : > { %1162 = vmatprep.subr.bf16.mxu0 %v705_v16  ;;  %1226 = vmatprep.subr.bf16.mxu1 %v705_v16  ;;  %v697_v18 = vld [vmem:[#allocation4] sm:$0xff]  ;;  %v710_v23 = vld [vmem:[#allocation3 + $0x28] sm:$0xff]  ;;  %v703_v29 = vld [vmem:[#allocation4 + $0x30] sm:$0xff] }
 0x263   : > { %1163 = vmatpush3.bf16.msra.mxu0 %v705_v16  ;;  %1234 = vmatpush3.bf16.msra.mxu1 %v705_v16  ;;  %v701_v19 = vld [vmem:[#allocation4 + $0x20] sm:$0xff]  ;;  %v698_v26 = vld [vmem:[#allocation4 + $0x8] sm:$0xff]  ;;  %v700_v30 = vld [vmem:[#allocation4 + $0x18] sm:$0xff] }
 0x264   : > { %1164 = vmatprep.subr.bf16.mxu0 %v706_v17  ;;  %1227 = vmatprep.subr.bf16.mxu1 %v706_v17  ;;  %v709_v22 = vld [vmem:[#allocation3 + $0x20] sm:$0xff]  ;;  %v702_v27 = vld [vmem:[#allocation4 + $0x28] sm:$0xff]  ;;  %v704_v31 = vld [vmem:[#allocation4 + $0x38] sm:$0xff] }
 0x265   : > { %1178 = vmatprep.mubr.bf16.mxu0 %v697_v18  ;;  %1186 = vmatprep.mubr.bf16.mxu1 %v701_v19  ;;  %v1039_v32 = vld [vmem:[%s234_s12] ss:$0 sm:$0xff] }
 0x266   : > { %v708_v21 = vld [vmem:[#allocation3 + $0x18] sm:$0xff] }
 0x267   : > { %v707_v20 = vld [vmem:[#allocation3 + $0x10] sm:$0xff]  ;;  %1165 = vmatpush3.bf16.msra.mxu0 %v706_v17  ;;  %1235 = vmatpush3.bf16.msra.mxu1 %v706_v17  ;;  %v712_v25 = vld [vmem:[#allocation3 + $0x38] sm:$0xff] }
 0x268   : > { %1166 = vmatprep.subr.bf16.mxu0 %v707_v20  ;;  %1228 = vmatprep.subr.bf16.mxu1 %v707_v20  ;;  %v711_v24 = vld [vmem:[#allocation3 + $0x30] sm:$0xff] }
 0x26b   : > { %1167 = vmatpush3.bf16.msra.mxu0 %v707_v20  ;;  %1236 = vmatpush3.bf16.msra.mxu1 %v707_v20 }
 0x26c   : > { %1168 = vmatprep.subr.bf16.mxu0 %v708_v21  ;;  %1229 = vmatprep.subr.bf16.mxu1 %v708_v21 }
 0x26f   : > { %1169 = vmatpush3.bf16.msra.mxu0 %v708_v21  ;;  %1237 = vmatpush3.bf16.msra.mxu1 %v708_v21 }
 0x270   : > { %1170 = vmatprep.subr.bf16.mxu0 %v709_v22  ;;  %1230 = vmatprep.subr.bf16.mxu1 %v709_v22 }
 0x273   : > { %1171 = vmatpush3.bf16.msra.mxu0 %v709_v22  ;;  %1238 = vmatpush3.bf16.msra.mxu1 %v709_v22 }
 0x274   : > { %1172 = vmatprep.subr.bf16.mxu0 %v710_v23  ;;  %1231 = vmatprep.subr.bf16.mxu1 %v710_v23 }
 0x277   : > { %1173 = vmatpush3.bf16.msra.mxu0 %v710_v23  ;;  %1239 = vmatpush3.bf16.msra.mxu1 %v710_v23 }
 0x278   : > { %1174 = vmatprep.subr.bf16.mxu0 %v711_v24  ;;  %1232 = vmatprep.subr.bf16.mxu1 %v711_v24 }
 0x27b   : > { %1175 = vmatpush3.bf16.msra.mxu0 %v711_v24  ;;  %1240 = vmatpush3.bf16.msra.mxu1 %v711_v24 }
 0x27c   : > { %1176 = vmatprep.subr.bf16.mxu0 %v712_v25  ;;  %1233 = vmatprep.subr.bf16.mxu1 %v712_v25 }
 0x27f   : > { %1177 = vmatpush3.bf16.msra.mxu0 %v712_v25  ;;  %1241 = vmatpush3.bf16.msra.mxu1 %v712_v25 }
 0x282   : > { %1179 = vmatmul.mubr.bf16.vlgmr.msra.gmra.mrb[0].mxu0 %v698_v26  ;;  %1187 = vmatmul.mubr.bf16.vlgmr.msra.gmra.mrb[0].mxu1 %v702_v27 }
 0x283   : > { %1182 = vmatprep.mubr.bf16.mxu0 %v699_v28  ;;  %1190 = vmatprep.mubr.bf16.mxu1 %v703_v29 }
 0x28a   : > { %1183 = vmatmul.mubr.bf16.gmra.mrb[4].mxu0 %v700_v30  ;;  %1191 = vmatmul.mubr.bf16.gmra.mrb[4].mxu1 %v704_v31 }
 0x355   : > { %v1180_v33 = vpop.f32.mrb[0].mxu0  ;;  %v1188_v34 = vpop.f32.mrb[0].mxu1 }
 0x356   : > { %v1741_v35 = vadd.f32 %v1180_v33, %v1039_v32  ;;  %v1743_v36 = vadd.f32 %v1188_v34, %v1039_v32  ;;  %v754_v37 = vpop.f32.mrb[1].mxu0  ;;  %v786_v38 = vpop.f32.mrb[1].mxu1 }
 0x357   : > { %v755_v39 = vadd.f32 %v1039_v32, %v754_v37  ;;  %v1745_v40 = vadd.f32 %v1039_v32, %v786_v38  ;;  %v1181_v41 = vpop.f32.mrb[2].mxu0  ;;  %v1189_v42 = vpop.f32.mrb[2].mxu1 }
 0x358   : > { %v766_v43 = vadd.f32 %v1181_v41, %v1039_v32  ;;  %v1747_v44 = vadd.f32 %v1189_v42, %v1039_v32  ;;  %v757_v45 = vpop.f32.mrb[3].mxu0  ;;  %v789_v46 = vpop.f32.mrb[3].mxu1  ;;  %v823_v3 = vmax.f32 (!%p1040_p12), %v1741_v35, 0.0  ;;  %v831_v15 = vmax.f32 (!%p1040_p12), %v1743_v36, 0.0 }
 0x359   : > { %v758_v47 = vadd.f32 %v1039_v32, %v757_v45  ;;  %v790_v48 = vadd.f32 %v1039_v32, %v789_v46  ;;  %v821_v1 = vmax.f32 (!%p1040_p12), %v755_v39, 0.0  ;;  %v829_v11 = vmax.f32 (!%p1040_p12), %v1745_v40, 0.0 }
 0x35a   : > { %v824_v4 = vmax.f32 (!%p1040_p12), %v766_v43, 0.0  ;;  %v832_v16 = vmax.f32 (!%p1040_p12), %v1747_v44, 0.0 }
 0x35b   : > { %820 = sbr.rel (%p1040_p12) target bundleno = 872 (0x368), region = 56  ;;  %v822_v2 = vmax.f32 (!%p1040_p12), %v758_v47, 0.0  ;;  %v830_v12 = vmax.f32 (!%p1040_p12), %v790_v48, 0.0 }
 0x35c   : > { %v838_v10 = vpack.c.bf16 (!%p1040_p12), %v824_v4, %v823_v3  ;;  %v842_v21 = vpack.c.bf16 (!%p1040_p12), %v832_v16, %v831_v15 }
 0x35d   : > { %v1184_v49 = vpop.f32.mrb[4].mxu0  ;;  %v1192_v50 = vpop.f32.mrb[4].mxu1  ;;  %v837_v9 = vpack.c.bf16 (!%p1040_p12), %v822_v2, %v821_v1  ;;  %v841_v17 = vpack.c.bf16 (!%p1040_p12), %v830_v12, %v829_v11 }
 0x35e   : > { %v779_v51 = vadd.f32 %v1184_v49, %v1039_v32  ;;  %v1749_v52 = vadd.f32 %v1192_v50, %v1039_v32  ;;  %v770_v53 = vpop.f32.mrb[5].mxu0  ;;  %v802_v54 = vpop.f32.mrb[5].mxu1  ;;  %848 = vst [vmem:[#allocation2 + $0x8] sm:$0xff] (!%p1040_p12), %v838_v10  ;;  %852 = vst [vmem:[#allocation2 + $0x28] sm:$0xff] (!%p1040_p12), %v842_v21 }
 0x35f   : > { %v771_v55 = vadd.f32 %v1039_v32, %v770_v53  ;;  %v803_v56 = vadd.f32 %v1039_v32, %v802_v54  ;;  %v1185_v57 = vpop.f32.mrb[6].mxu0  ;;  %v1193_v58 = vpop.f32.mrb[6].mxu1  ;;  %847 = vst [vmem:[#allocation2] sm:$0xff] (!%p1040_p12), %v837_v9  ;;  %851 = vst [vmem:[#allocation2 + $0x20] sm:$0xff] (!%p1040_p12), %v841_v17 }
 0x360   : > { %v782_v59 = vadd.f32 %v1185_v57, %v1039_v32  ;;  %v814_v60 = vadd.f32 %v1193_v58, %v1039_v32  ;;  %v773_v61 = vpop.f32.mrb[7].mxu0  ;;  %v805_v62 = vpop.f32.mrb[7].mxu1  ;;  %v827_v7 = vmax.f32 (!%p1040_p12), %v779_v51, 0.0  ;;  %v835_v20 = vmax.f32 (!%p1040_p12), %v1749_v52, 0.0 }
 0x361   : > { %v774_v63 = vadd.f32 %v1039_v32, %v773_v61  ;;  %v806_v0 = vadd.f32 %v1039_v32, %v805_v62  ;;  %v825_v5 = vmax.f32 (!%p1040_p12), %v771_v55, 0.0  ;;  %v833_v18 = vmax.f32 (!%p1040_p12), %v803_v56, 0.0 }
 0x362   : > { %v828_v8 = vmax.f32 %v782_v59, 0.0  ;;  %v836_v22 = vmax.f32 %v814_v60, 0.0 }
 0x363   : > { %v826_v6 = vmax.f32 %v774_v63, 0.0  ;;  %v834_v19 = vmax.f32 %v806_v0, 0.0 }
 0x364   : > { %v840_v14 = vpack.c.bf16 %v828_v8, %v827_v7  ;;  %v844_v24 = vpack.c.bf16 %v836_v22, %v835_v20 }
 0x365   : > { %v839_v13 = vpack.c.bf16 %v826_v6, %v825_v5  ;;  %v843_v23 = vpack.c.bf16 %v834_v19, %v833_v18 }
 0x366   : > { %850 = vst [vmem:[#allocation2 + $0x18] sm:$0xff] %v840_v14  ;;  %854 = vst [vmem:[#allocation2 + $0x38] sm:$0xff] %v844_v24 }
 0x367   : > { %849 = vst [vmem:[#allocation2 + $0x10] sm:$0xff] %v839_v13  ;;  %853 = vst [vmem:[#allocation2 + $0x30] sm:$0xff] %v843_v23 }
 0x368 PF: > { %p1041_p0 = scmp.ne.s32.totalorder %s1507_s18, 2 }
 0x369   : > { %858 = vst [vmem:[#allocation11] sm:$0xff] (!%p1041_p0), %v755_v39  ;;  %859 = vst [vmem:[#allocation11 + $0x8] sm:$0xff] (!%p1041_p0), %v758_v47 }
 0x36a   : > { %857 = sbr.rel (%p1041_p0) target bundleno = 881 (0x371), region = 60  ;;  %860 = vst [vmem:[#allocation11 + $0x10] sm:$0xff] (!%p1041_p0), %v1741_v35  ;;  %861 = vst [vmem:[#allocation11 + $0x18] sm:$0xff] (!%p1041_p0), %v766_v43 }
 0x36b   : > { %862 = vst [vmem:[#allocation11 + $0x20] sm:$0xff] (!%p1041_p0), %v771_v55  ;;  %863 = vst [vmem:[#allocation11 + $0x28] sm:$0xff] (!%p1041_p0), %v774_v63 }
 0x36c   : > { %864 = vst [vmem:[#allocation11 + $0x30] sm:$0xff] (!%p1041_p0), %v779_v51  ;;  %865 = vst [vmem:[#allocation11 + $0x38] sm:$0xff] (!%p1041_p0), %v782_v59 }
 0x36d   : > { %866 = vst [vmem:[#allocation11 + $0x40] sm:$0xff] (!%p1041_p0), %v1745_v40  ;;  %867 = vst [vmem:[#allocation11 + $0x48] sm:$0xff] (!%p1041_p0), %v790_v48 }
 0x36e   : > { %868 = vst [vmem:[#allocation11 + $0x50] sm:$0xff] (!%p1041_p0), %v1743_v36  ;;  %869 = vst [vmem:[#allocation11 + $0x58] sm:$0xff] (!%p1041_p0), %v1747_v44 }
 0x36f   : > { %870 = vst [vmem:[#allocation11 + $0x60] sm:$0xff] (!%p1041_p0), %v803_v56  ;;  %871 = vst [vmem:[#allocation11 + $0x68] sm:$0xff] (!%p1041_p0), %v806_v0 }
 0x370   : > { %872 = vst [vmem:[#allocation11 + $0x70] sm:$0xff] (!%p1041_p0), %v1749_v52  ;;  %873 = vst [vmem:[#allocation11 + $0x78] sm:$0xff] (!%p1041_p0), %v814_v60 }
 0x371 PF: > { %p1765_p6 = scmp.eq.s32.totalorder %s1002_s21, 2  ;;  %s1522_s25 = smov [#allocation11]  }
 0x372   : > { %s890_s11 = sshll.u32 %s1522_s25, 4  ;;  %s891_s11 = int_to_ptr.vmem [resolvable:$true] %s890_s11 }
 0x373   : > { %s1429_s12 = scalar_lea.vmem %s891_s11, 2048  ;;  %s1435_s24 = scalar_lea.vmem %s891_s11, 4096 }
 0x374   : > { %p1430_p7 = scmp.ne.s32.totalorder %s891_s11, %s1429_s12  ;;  %p1436_p5 = scmp.lt.s32.totalorder %s891_s11, %s891_s11 }
 0x375   : > { %p1437_p8 = scmp.lt.s32.totalorder %s1435_s24, %s1429_s12 }
 0x376   : > { %p1431_p1 = pnand %p1430_p7, %p1765_p6 }
 0x377   : > { %p1438_p9 = por %p1437_p8, %p1436_p5 }
 0x378   : > { %p1432_p4 = pneg %p1431_p1 }
 0x37a   : > { %p1439_p10 = pnand %p1438_p9, %p1432_p4 }
 0x37c   : > { %1442 = shalt.err (!%p1439_p10)
}
 0x37d   : > { %s1443_s10 = scalar_lea.hbm %s1812_s4, 2048 }
 0x37e   : > { %p1444_p11 = scmp.ne.s32.totalorder %s1812_s4, %s1443_s10  ;;  %p1449_p3 = scmp.lt.u32.totalorder %s1443_s10, %s1812_s4 }
 0x380   : > { %p1445_p13 = pnand %p1444_p11, %p1765_p6 }
 0x382   : > { %p1446_p2 = pneg %p1445_p13 }
 0x384   : > { %p1451_p12 = pnand %p1449_p3, %p1446_p2 }
 0x386   : > { %1454 = shalt.err (!%p1451_p12)
}
 0x387   : > { %s1523_s28 = smov 128   ;;  %s1524_s30 = smov 8  }
 0x388   : > { %1249 = dma.vmem_to_hbm [thread:$0]  (%p1765_p6), %s891_s11, 2048, %s1812_s4, [#allocation8], %s1523_s28, %s1523_s28, %s1524_s30  }
 0x389 PF: > { %p1268_p0 = scmp.ge.s32.totalorder %s1515_s20, 2  ;;  %p1269_p7 = scmp.eq.s32.totalorder %s1003_s22, 2 }
 0x38b   : > { %p1261_p1 = pnand %p1269_p7, %p1268_p0 }
 0x38d   : > { %1490 = dma.done.wait (!%p1261_p1), [#allocation8], 2048  }
 0x38e   : > { %1492 = vsyncadd (!%p1261_p1), [#allocation8], 4294965248  ;;  %s21_s20 = sadd.s32 1, %s1515_s20   ;;  %s1826_s5 = smov %s1833_s15 }
 0x38f   : > { %p18_p4 = scmp.ge.s32.totalorder %s21_s20, 5   ;;  %s1827_s15 = smov %s1499_s16 }
 0x390   : > { %s1828_s16 = smov %s1503_s17  ;;  %s1829_s17 = smov %s1639_s6 }
 0x391   : > { %s1830_s18 = smov %s1511_s19  ;;  %s1831_s19 = smov %s1826_s5 }
 0x392   :  { %20 = sbr.rel (!%p18_p4) target bundleno = 7 (0x7), region = 107 }
 0x399   :  { %911 = vsyncpa [#allocation7], 1 }
 0x39a   :  { %913 = vsyncpa [#allocation7 + $0x1], 1 }
 0x39b   :  { %914 = vsyncpa [#allocation10], 1 }
 0x39c   :  { %916 = vsyncpa [#allocation10 + $0x1], 1 }
 0x39d   :  { %917 = vsyncpa [#allocation8], 1 }
 0x39e   :  { %919 = vsyncpa [#allocation8 + $0x1], 1 }
 0x39f   :  { %920 = vsyncmov [#allocation5] }
 0x3a2   :  { %s921_s22 = vpop.sfrf %920 }
 0x3a3   :  { %p1046_p6 = scmp.ne.s32.totalorder %s921_s22, 0 }
 0x3a5   :  { %925 = shalt.err (%p1046_p6)  }

</bundles_post_ra>
